<compile_context>
chip_gen: v7x
topology: tpu7x:2x2x1
jax: 0.10.0
libtpu: 0.0.40
codegen_flags: <defaults>
</compile_context>

<pallas_src>
import functools

import jax
import jax.numpy as jnp
from jax.experimental import pallas as pl
from jax.experimental.pallas import tpu as pltpu


def _vae_encoder_kernel(x_ref, noise_ref, w1_ref, b1_ref, w2_ref, b2_ref,
                        wh_ref, bh_ref, out_ref, klrow_ref, *, lat_size):
    # Layer 1: Linear(init_size -> 96, padded to 128) + ReLU.
    # bf16 MXU inputs, f32 accumulation; elementwise in f32.
    h1 = jnp.dot(x_ref[...], w1_ref[...], preferred_element_type=jnp.float32)
    h1 = jnp.maximum(h1 + b1_ref[...], 0.0)

    # Layer 2: Linear(96 -> 64, padded 128 -> 128) + ReLU.
    h2 = jnp.dot(h1.astype(jnp.bfloat16), w2_ref[...],
                 preferred_element_type=jnp.float32)
    h2 = jnp.maximum(h2 + b2_ref[...], 0.0)

    # Fused heads: one matmul producing [mu | sigma] of width 2*lat.
    y = jnp.dot(h2.astype(jnp.bfloat16), wh_ref[...],
                preferred_element_type=jnp.float32) + bh_ref[...]
    mu = y[:, :lat_size]
    sigma = y[:, lat_size:]

    # Reparameterization: std = exp(0.5*sigma); exp(sigma) == std*std (one exp only).
    std = jnp.exp(0.5 * sigma)
    exp_sigma = std * std
    out_ref[...] = (mu + std * noise_ref[...]).astype(out_ref.dtype)

    # Per-row partial KL: -0.5 * sum_lat(1 + sigma - mu^2 - exp(sigma)).
    klrow_ref[...] = -0.5 * jnp.sum(1.0 + sigma - mu * mu - exp_sigma,
                                    axis=1, keepdims=True)


def _round_up(n, m):
    return ((n + m - 1) // m) * m


def variational_encoder_forward(x, params, noise, *, batch_tile=256):
    """x: (B, init_size) f32, noise: (B, lat) f32.

    Returns (sample (B, lat) f32, kl scalar f32).
    """
    B, init_size = x.shape
    lat = params["wmu"].shape[1]

    # ---- pad hidden widths to 128 lanes (exact: padded columns stay zero) and
    #      fuse the mu/sigma heads; cast matmul weights to bf16 once. ----
    H1 = params["w1"].shape[1]
    H2 = params["w2"].shape[1]
    H1p = _round_up(H1, 128)
    H2p = _round_up(H2, 128)

    w1 = jnp.pad(params["w1"], ((0, 0), (0, H1p - H1))).astype(jnp.bfloat16)
    b1 = jnp.pad(params["b1"], ((0, 0), (0, H1p - H1))).astype(jnp.float32)
    w2 = jnp.pad(params["w2"], ((0, H1p - H1), (0, H2p - H2))).astype(jnp.bfloat16)
    b2 = jnp.pad(params["b2"], ((0, 0), (0, H2p - H2))).astype(jnp.float32)
    wh = jnp.pad(jnp.concatenate([params["wmu"], params["wsig"]], axis=1),
                 ((0, H2p - H2), (0, 0))).astype(jnp.bfloat16)
    bh = jnp.concatenate([params["bmu"], params["bsig"]], axis=1).astype(jnp.float32)

    # ---- batch tiling: pad B to a sublane-friendly multiple, grid over tiles. ----
    Bp = _round_up(B, 8)
    if Bp <= batch_tile:
        tb = Bp
    else:
        tb = batch_tile
        Bp = _round_up(Bp, tb)
    num_tiles = Bp // tb

    xp = jnp.pad(x, ((0, Bp - B), (0, 0))).astype(jnp.bfloat16)
    noise_p = jnp.pad(noise, ((0, Bp - B), (0, 0))).astype(jnp.float32)

    tiled = lambda shape: pl.BlockSpec(shape, lambda i: (i, 0))
    resident = lambda arr: pl.BlockSpec(arr.shape, lambda i: (0, 0))

    sample_pad, kl_rows = pl.pallas_call(
        functools.partial(_vae_encoder_kernel, lat_size=lat),
        out_shape=(
            jax.ShapeDtypeStruct((Bp, lat), jnp.float32),
            jax.ShapeDtypeStruct((Bp, 1), jnp.float32),
        ),
        grid=(num_tiles,),
        in_specs=[
            tiled((tb, init_size)),    # x
            tiled((tb, lat)),          # noise
            resident(w1), resident(b1),
            resident(w2), resident(b2),
            resident(wh), resident(bh),
        ],
        out_specs=(
            tiled((tb, lat)),          # z sample
            tiled((tb, 1)),            # per-row partial KL
        ),
        compiler_params=pltpu.CompilerParams(
            dimension_semantics=("parallel",)),
    )(xp, noise_p, w1, b1, w2, b2, wh, bh)

    sample = sample_pad[:B]
    kl = jnp.sum(kl_rows[:B, 0])
    return sample, kl


def init_params(key, init_size, lat_size):
    """Deterministic parameter init; weights stored (in, out) = PyTorch W.T."""
    ks = jax.random.split(key, 8)

    def lin(kw, kb, fan_in, fan_out):
        bound = 1.0 / jnp.sqrt(fan_in)
        w = jax.random.uniform(kw, (fan_in, fan_out), jnp.float32, -bound, bound)
        b = jax.random.uniform(kb, (1, fan_out), jnp.float32, -bound, bound)
        return w, b

    w1, b1 = lin(ks[0], ks[1], init_size, 96)
    w2, b2 = lin(ks[2], ks[3], 96, 64)
    wmu, bmu = lin(ks[4], ks[5], 64, lat_size)
    wsig, bsig = lin(ks[6], ks[7], 64, lat_size)
    return dict(w1=w1, b1=b1, w2=w2, b2=b2,
                wmu=wmu, bmu=bmu, wsig=wsig, bsig=bsig)


def reference_forward(x, params, noise):
    h1 = jnp.maximum(x @ params["w1"] + params["b1"], 0.0)
    h2 = jnp.maximum(h1 @ params["w2"] + params["b2"], 0.0)
    mu = h2 @ params["wmu"] + params["bmu"]
    sigma = h2 @ params["wsig"] + params["bsig"]
    std = jnp.exp(0.5 * sigma)
    kl = -0.5 * jnp.sum(1.0 + sigma - mu ** 2 - jnp.exp(sigma))
    return mu + std * noise, kl


if __name__ == "__main__":
    key = jax.random.PRNGKey(0)
    k_param, k_x, k_noise = jax.random.split(key, 3)

    B, init_size, lat_size = 8, 32, 8

    params = init_params(k_param, init_size, lat_size)
    x = jax.random.normal(k_x, (B, init_size), jnp.float32)
    # randn_like(std): standard-normal noise with the output's shape
    noise = jax.random.normal(k_noise, (B, lat_size), jnp.float32)

    sample, kl = variational_encoder_forward(x, params, noise)
    sample = jax.block_until_ready(sample)
    kl = jax.block_until_ready(kl)

    # Sanity check against a pure-JAX f32 reference.  Kernel matmuls use bf16
    # inputs with f32 accumulation, so tolerances are loosened accordingly.
    ref_sample, ref_kl = reference_forward(x, params, noise)
    assert jnp.allclose(sample, ref_sample, atol=5e-2, rtol=5e-2), (
        float(jnp.max(jnp.abs(sample - ref_sample))))
    assert jnp.allclose(kl, ref_kl, atol=2e-1, rtol=1e-1), (float(kl), float(ref_kl))

    print("KERNEL_OK")
</pallas_src>

<mosaic_0001>
module attributes {stable_mosaic.version = 11 : i64} {
  func.func @_vae_encoder_kernel(%arg0: i32, %arg1: memref<8x32xbf16, #tpu.memory_space<vmem>>, %arg2: memref<8x8xf32, #tpu.memory_space<vmem>>, %arg3: memref<32x128xbf16, #tpu.memory_space<vmem>>, %arg4: memref<1x128xf32, #tpu.memory_space<vmem>>, %arg5: memref<128x128xbf16, #tpu.memory_space<vmem>>, %arg6: memref<1x128xf32, #tpu.memory_space<vmem>>, %arg7: memref<128x16xbf16, #tpu.memory_space<vmem>>, %arg8: memref<1x16xf32, #tpu.memory_space<vmem>>, %arg9: memref<8x8xf32, #tpu.memory_space<vmem>>, %arg10: memref<8x1xf32, #tpu.memory_space<vmem>>) attributes {dimension_semantics = [#tpu.dimension_semantics<parallel>], iteration_bounds = array<i64: 1>, scalar_prefetch = 0 : i64, scratch_operands = 0 : i64, tpu.core_type = #tpu.core_type<tc>, window_params = [{transform_indices = @transform_0, window_bounds = array<i64: 8, 32>}, {transform_indices = @transform_1, window_bounds = array<i64: 8, 8>}, {pipeline_mode = #tpu.pipeline_mode<synchronous>, transform_indices = @transform_2, window_bounds = array<i64: 32, 128>}, {pipeline_mode = #tpu.pipeline_mode<synchronous>, transform_indices = @transform_3, window_bounds = array<i64: 1, 128>}, {pipeline_mode = #tpu.pipeline_mode<synchronous>, transform_indices = @transform_4, window_bounds = array<i64: 128, 128>}, {pipeline_mode = #tpu.pipeline_mode<synchronous>, transform_indices = @transform_5, window_bounds = array<i64: 1, 128>}, {pipeline_mode = #tpu.pipeline_mode<synchronous>, transform_indices = @transform_6, window_bounds = array<i64: 128, 16>}, {pipeline_mode = #tpu.pipeline_mode<synchronous>, transform_indices = @transform_7, window_bounds = array<i64: 1, 16>}, {transform_indices = @transform_8, window_bounds = array<i64: 8, 8>}, {transform_indices = @transform_9, window_bounds = array<i64: 8, 1>}]} {
    %c0 = arith.constant 0 : index
    %c0_0 = arith.constant 0 : index
    %0 = vector.load %arg1[%c0, %c0_0] : memref<8x32xbf16, #tpu.memory_space<vmem>>, vector<8x32xbf16>
    %c0_1 = arith.constant 0 : index
    %c0_2 = arith.constant 0 : index
    %1 = vector.load %arg3[%c0_1, %c0_2] : memref<32x128xbf16, #tpu.memory_space<vmem>>, vector<32x128xbf16>
    %cst = arith.constant dense<0.000000e+00> : vector<8x128xf32>
    %2 = tpu.matmul %0, %1, %cst {dimension_numbers = #tpu.dot_dimension_numbers<[1], [0], [0], [1], [0, 0, 1, 1], [], []>} : vector<8x32xbf16>, vector<32x128xbf16>, vector<8x128xf32> -> vector<8x128xf32>
    %c0_3 = arith.constant 0 : index
    %c0_4 = arith.constant 0 : index
    %3 = vector.load %arg4[%c0_3, %c0_4] : memref<1x128xf32, #tpu.memory_space<vmem>>, vector<1x128xf32>
    %4 = vector.broadcast %3 : vector<1x128xf32> to vector<8x128xf32>
    %5 = arith.addf %2, %4 : vector<8x128xf32>
    %cst_5 = arith.constant 0.000000e+00 : f32
    %6 = vector.broadcast %cst_5 : f32 to vector<8x128xf32>
    %7 = arith.maximumf %5, %6 : vector<8x128xf32>
    %8 = arith.truncf %7 : vector<8x128xf32> to vector<8x128xbf16>
    %c0_6 = arith.constant 0 : index
    %c0_7 = arith.constant 0 : index
    %9 = vector.load %arg5[%c0_6, %c0_7] : memref<128x128xbf16, #tpu.memory_space<vmem>>, vector<128x128xbf16>
    %cst_8 = arith.constant dense<0.000000e+00> : vector<8x128xf32>
    %10 = tpu.matmul %8, %9, %cst_8 {dimension_numbers = #tpu.dot_dimension_numbers<[1], [0], [0], [1], [0, 0, 1, 1], [], []>} : vector<8x128xbf16>, vector<128x128xbf16>, vector<8x128xf32> -> vector<8x128xf32>
    %c0_9 = arith.constant 0 : index
    %c0_10 = arith.constant 0 : index
    %11 = vector.load %arg6[%c0_9, %c0_10] : memref<1x128xf32, #tpu.memory_space<vmem>>, vector<1x128xf32>
    %12 = vector.broadcast %11 : vector<1x128xf32> to vector<8x128xf32>
    %13 = arith.addf %10, %12 : vector<8x128xf32>
    %cst_11 = arith.constant 0.000000e+00 : f32
    %14 = vector.broadcast %cst_11 : f32 to vector<8x128xf32>
    %15 = arith.maximumf %13, %14 : vector<8x128xf32>
    %16 = arith.truncf %15 : vector<8x128xf32> to vector<8x128xbf16>
    %c0_12 = arith.constant 0 : index
    %c0_13 = arith.constant 0 : index
    %17 = vector.load %arg7[%c0_12, %c0_13] : memref<128x16xbf16, #tpu.memory_space<vmem>>, vector<128x16xbf16>
    %cst_14 = arith.constant dense<0.000000e+00> : vector<8x16xf32>
    %18 = tpu.matmul %16, %17, %cst_14 {dimension_numbers = #tpu.dot_dimension_numbers<[1], [0], [0], [1], [0, 0, 1, 1], [], []>} : vector<8x128xbf16>, vector<128x16xbf16>, vector<8x16xf32> -> vector<8x16xf32>
    %c0_15 = arith.constant 0 : index
    %c0_16 = arith.constant 0 : index
    %19 = vector.load %arg8[%c0_15, %c0_16] : memref<1x16xf32, #tpu.memory_space<vmem>>, vector<1x16xf32>
    %20 = vector.broadcast %19 : vector<1x16xf32> to vector<8x16xf32>
    %21 = arith.addf %18, %20 : vector<8x16xf32>
    %22 = vector.extract_strided_slice %21 {offsets = [0, 0], sizes = [8, 8], strides = [1, 1]} : vector<8x16xf32> to vector<8x8xf32>
    %23 = vector.extract_strided_slice %21 {offsets = [0, 8], sizes = [8, 8], strides = [1, 1]} : vector<8x16xf32> to vector<8x8xf32>
    %cst_17 = arith.constant 5.000000e-01 : f32
    %24 = vector.broadcast %cst_17 : f32 to vector<8x8xf32>
    %25 = arith.mulf %24, %23 : vector<8x8xf32>
    %26 = math.exp %25 : vector<8x8xf32>
    %27 = arith.mulf %26, %26 : vector<8x8xf32>
    %c0_18 = arith.constant 0 : index
    %c0_19 = arith.constant 0 : index
    %28 = vector.load %arg2[%c0_18, %c0_19] : memref<8x8xf32, #tpu.memory_space<vmem>>, vector<8x8xf32>
    %29 = arith.mulf %26, %28 : vector<8x8xf32>
    %30 = arith.addf %22, %29 : vector<8x8xf32>
    %c0_20 = arith.constant 0 : index
    %c0_21 = arith.constant 0 : index
    %31 = vector.load %arg9[%c0_20, %c0_21] : memref<8x8xf32, #tpu.memory_space<vmem>>, vector<8x8xf32>
    tpu.vector_store %arg9[%c0_20, %c0_21], %30 {strides = array<i32>} : memref<8x8xf32, #tpu.memory_space<vmem>>, vector<8x8xf32>,
    %cst_22 = arith.constant 1.000000e+00 : f32
    %32 = vector.broadcast %cst_22 : f32 to vector<8x8xf32>
    %33 = arith.addf %32, %23 : vector<8x8xf32>
    %34 = arith.mulf %22, %22 : vector<8x8xf32>
    %35 = arith.subf %33, %34 : vector<8x8xf32>
    %36 = arith.subf %35, %27 : vector<8x8xf32>
    %cst_23 = arith.constant dense<0.000000e+00> : vector<8xf32>
    %37 = vector.multi_reduction <add>, %36, %cst_23 [1] : vector<8x8xf32> to vector<8xf32>
    %38 = vector.shape_cast %37 : vector<8xf32> to vector<8x1xf32>
    %cst_24 = arith.constant -5.000000e-01 : f32
    %39 = vector.broadcast %cst_24 : f32 to vector<8x1xf32>
    %40 = arith.mulf %39, %38 : vector<8x1xf32>
    %c0_25 = arith.constant 0 : index
    %c0_26 = arith.constant 0 : index
    %41 = vector.load %arg10[%c0_25, %c0_26] : memref<8x1xf32, #tpu.memory_space<vmem>>, vector<8x1xf32>
    tpu.vector_store %arg10[%c0_25, %c0_26], %40 {strides = array<i32>} : memref<8x1xf32, #tpu.memory_space<vmem>>, vector<8x1xf32>,
    return
  }
  func.func @transform_0(%arg0: i32) -> (i32, i32) {
    %c0_i32 = arith.constant 0 : i32
    %c0_i32_0 = arith.constant 0 : i32
    return %arg0, %c0_i32 : i32, i32
  }
  func.func @transform_1(%arg0: i32) -> (i32, i32) {
    %c0_i32 = arith.constant 0 : i32
    %c0_i32_0 = arith.constant 0 : i32
    return %arg0, %c0_i32 : i32, i32
  }
  func.func @transform_2(%arg0: i32) -> (i32, i32) {
    %c0_i32 = arith.constant 0 : i32
    %c0_i32_0 = arith.constant 0 : i32
    %c0_i32_1 = arith.constant 0 : i32
    return %c0_i32, %c0_i32_0 : i32, i32
  }
  func.func @transform_3(%arg0: i32) -> (i32, i32) {
    %c0_i32 = arith.constant 0 : i32
    %c0_i32_0 = arith.constant 0 : i32
    %c0_i32_1 = arith.constant 0 : i32
    return %c0_i32, %c0_i32_0 : i32, i32
  }
  func.func @transform_4(%arg0: i32) -> (i32, i32) {
    %c0_i32 = arith.constant 0 : i32
    %c0_i32_0 = arith.constant 0 : i32
    %c0_i32_1 = arith.constant 0 : i32
    return %c0_i32, %c0_i32_0 : i32, i32
  }
  func.func @transform_5(%arg0: i32) -> (i32, i32) {
    %c0_i32 = arith.constant 0 : i32
    %c0_i32_0 = arith.constant 0 : i32
    %c0_i32_1 = arith.constant 0 : i32
    return %c0_i32, %c0_i32_0 : i32, i32
  }
  func.func @transform_6(%arg0: i32) -> (i32, i32) {
    %c0_i32 = arith.constant 0 : i32
    %c0_i32_0 = arith.constant 0 : i32
    %c0_i32_1 = arith.constant 0 : i32
    return %c0_i32, %c0_i32_0 : i32, i32
  }
  func.func @transform_7(%arg0: i32) -> (i32, i32) {
    %c0_i32 = arith.constant 0 : i32
    %c0_i32_0 = arith.constant 0 : i32
    %c0_i32_1 = arith.constant 0 : i32
    return %c0_i32, %c0_i32_0 : i32, i32
  }
  func.func @transform_8(%arg0: i32) -> (i32, i32) {
    %c0_i32 = arith.constant 0 : i32
    %c0_i32_0 = arith.constant 0 : i32
    return %arg0, %c0_i32 : i32, i32
  }
  func.func @transform_9(%arg0: i32) -> (i32, i32) {
    %c0_i32 = arith.constant 0 : i32
    %c0_i32_0 = arith.constant 0 : i32
    return %arg0, %c0_i32 : i32, i32
  }
}

</mosaic_0001>

<bundles_post_ra>
// kernel: tpu_custom_call.1
= control target key start
LH: loop header
LB: loop body
LE: loop exit
PB: predicated region body
PF: predicated region fallthrough
CT: control target
= control target key end

     0   :  { %15 = vsyncpa [#allocation3], 0  ;;  %s779_s0 = inlined_call_operand.hbm [shape: bf16[8,32], index: 0, kind: input, shape index: {}]   ;;  %s780_s1 = inlined_call_operand.hbm [shape: f32[8,8], index: 1, kind: input, shape index: {}]   ;;  %s781_s2 = inlined_call_operand.vmem [shape: bf16[32,128], index: 2, kind: input, shape index: {}]   ;;  %s782_s3 = inlined_call_operand.vmem [shape: f32[1,128], index: 3, kind: input, shape index: {}]   ;;  %s783_s4 = inlined_call_operand.vmem [shape: bf16[128,128], index: 4, kind: input, shape index: {}]   ;;  %s784_s5 = inlined_call_operand.vmem [shape: f32[1,128], index: 5, kind: input, shape index: {}]   ;;  %s785_s6 = inlined_call_operand.vmem [shape: bf16[128,16], index: 6, kind: input, shape index: {}]   ;;  %s786_s7 = inlined_call_operand.vmem [shape: f32[1,16], index: 7, kind: input, shape index: {}]   ;;  %s787_s8 = inlined_call_operand.hbm [shape: f32[8,8], index: 8, kind: output, shape index: {0}]   ;;  %s788_s9 = inlined_call_operand.vmem [shape: f32[8,1], index: 9, kind: output, shape index: {1}]  }
   0x1   :  { %16 = vsyncpa [#allocation6], 0 }
   0x2   :  { %17 = vsyncpa [#allocation4], 0  ;;  %s596_s30 = smov [#allocation2]   ;;  %s597_s11 = smov [#allocation5]  }
   0x3   :  { %s24_s10 = sshll.u32 %s596_s30, 4  ;;  %s34_s12 = sshll.u32 %s597_s11, 4  ;;  %s25_s10 = int_to_ptr.vmem [resolvable:$true] %s24_s10  ;;  %s35_s12 = int_to_ptr.vmem [resolvable:$true] %s34_s12 }
   0x4   :  { %s524_s15 = scalar_lea.hbm %s779_s0, 64 }
   0x5   :  { %p525_p0 = scmp.ne.s32.totalorder %s779_s0, %s524_s15  ;;  %p528_p1 = scmp.lt.u32.totalorder %s524_s15, %s779_s0 }
   0x7   :  { %p530_p2 = pnand %p528_p1, %p525_p0 }
   0x9   :  { %533 = shalt.err (!%p530_p2)
}
   0xa   :  { %s534_s20 = scalar_lea.vmem %s25_s10, 64  ;;  %p539_p4 = scmp.lt.s32.totalorder %s25_s10, %s25_s10 }
   0xb   :  { %p535_p3 = scmp.ne.s32.totalorder %s25_s10, %s534_s20  ;;  %p540_p5 = scmp.lt.s32.totalorder %s534_s20, %s534_s20 }
   0xd   :  { %p541_p6 = por %p540_p5, %p539_p4 }
   0xf   :  { %p542_p7 = pnand %p541_p6, %p535_p3 }
  0x11   :  { %545 = shalt.err (!%p542_p7)
}
  0x12   :  { %27 = dma.hbm_to_vmem [thread:$0]  %s779_s0, 64, %s25_s10, [#allocation3]  }
  0x13   :  { %s546_s25 = scalar_lea.hbm %s780_s1, 128 }
  0x14   :  { %p547_p8 = scmp.ne.s32.totalorder %s780_s1, %s546_s25  ;;  %p550_p9 = scmp.lt.u32.totalorder %s546_s25, %s780_s1 }
  0x16   :  { %p552_p10 = pnand %p550_p9, %p547_p8 }
  0x18   :  { %555 = shalt.err (!%p552_p10)
}
  0x19   :  { %s556_s30 = scalar_lea.vmem %s35_s12, 128  ;;  %p561_p12 = scmp.lt.s32.totalorder %s35_s12, %s35_s12 }
  0x1a   :  { %p557_p11 = scmp.ne.s32.totalorder %s35_s12, %s556_s30  ;;  %p562_p13 = scmp.lt.s32.totalorder %s556_s30, %s556_s30 }
  0x1c   :  { %p563_p0 = por %p562_p13, %p561_p12 }
  0x1e   :  { %p564_p1 = pnand %p563_p0, %p557_p11 }
  0x20   :  { %567 = shalt.err (!%p564_p1)
}
  0x21   :  { %37 = dma.hbm_to_vmem [thread:$0]  %s780_s1, 128, %s35_s12, [#allocation6]  }
  0x22   :  { %590 = dma.done.wait [#allocation3], 64  }
  0x23   :  { %591 = vsyncadd [#allocation3], 4294967232 }
  0x24   :  { %592 = dma.done.wait [#allocation6], 128  }
  0x25   :  { %593 = vsyncadd [#allocation6], 4294967168  ;;  %v598_v0 = vmov 0.0   ;;  %vm599_vm0 = vmmov 0   ;;  %v504_v1 = vld [vmem:[%s781_s2] sm:$0xff]   ;;  %v505_v2 = vld [vmem:[%s781_s2 + $0x8] sm:$0xff]  }
  0x26   :  { %449 = vmatprep.subr.bf16.mxu0 %v598_v0  ;;  %453 = vmatprep.mubr.msk.bf16.mxu0 %vm599_vm0, %v598_v0  ;;  %v506_v3 = vld [vmem:[%s783_s4] sm:$0xff]   ;;  %vm81_vm1 = vcmask 261120   ;;  %v507_v4 = vld [vmem:[%s783_s4 + $0x8] sm:$0xff]   ;;  %v508_v6 = vld [vmem:[%s783_s4 + $0x10] sm:$0xff]   ;;  %vm366_vm2 = vcmask 64512  }
  0x27   :  { %457 = vmatprep.subr.bf16.mxu1 %v598_v0  ;;  %473 = vmatprep.mubr.msk.bf16.mxu1 %vm599_vm0, %v598_v0  ;;  %v57_v5 = vld [vmem:[#allocation2] sm:$0xf]  ;;  %v509_v7 = vld [vmem:[%s783_s4 + $0x18] sm:$0xff]   ;;  %v511_v9 = vld [vmem:[%s783_s4 + $0x28] sm:$0xff]  }
  0x28   :  { %450 = vmatpush3.bf16.msra.mxu0 %v504_v1  ;;  %458 = vmatpush3.bf16.msra.mxu1 %v506_v3  ;;  %v510_v8 = vld [vmem:[%s783_s4 + $0x20] sm:$0xff]   ;;  %v512_v10 = vld [vmem:[%s783_s4 + $0x30] sm:$0xff]   ;;  %v513_v11 = vld [vmem:[%s783_s4 + $0x38] sm:$0xff]  }
  0x29   :  { %451 = vmatprep.subr.bf16.mxu0 %v598_v0  ;;  %459 = vmatprep.subr.bf16.mxu1 %v598_v0  ;;  %v514_v12 = vld [vmem:[%s785_s6] sm:$0xff]   ;;  %v515_v13 = vld [vmem:[%s785_s6 + $0x8] sm:$0xff]   ;;  %v516_v14 = vld [vmem:[%s785_s6 + $0x10] sm:$0xff]  }
  0x2a   :  { %v517_v15 = vld [vmem:[%s785_s6 + $0x18] sm:$0xff]   ;;  %v518_v16 = vld [vmem:[%s785_s6 + $0x20] sm:$0xff]   ;;  %v519_v17 = vld [vmem:[%s785_s6 + $0x28] sm:$0xff]  }
  0x2b   :  { %v406_v18 = vld [vmem:[%s782_s3] ss:$0 sm:$0xff]  ;;  %v520_v26 = vld [vmem:[%s785_s6 + $0x30] sm:$0xff]   ;;  %v521_v27 = vld [vmem:[%s785_s6 + $0x38] sm:$0xff]   ;;  %s600_s3 = smov 8   ;;  %s602_s6 = smov [#allocation7]  }
  0x2c   :  { %452 = vmatpush3.bf16.msra.mxu0 %v505_v2  ;;  %460 = vmatpush3.bf16.msra.mxu1 %v507_v4  ;;  %v355_v28 = vld [vmem:[#allocation5] sm:$0xff]  ;;  %v410_v29 = vld [vmem:[%s784_s5] ss:$0 sm:$0xff]  ;;  %s601_s5 = smov 120  }
  0x2d   :  { %477 = vmatprep.subr.bf16.mxu0 %v598_v0  ;;  %461 = vmatprep.subr.bf16.mxu1 %v598_v0  ;;  %v419_v37 = vld [vmem:[%s786_s7] ss:$0 sm:$0xff]  ;;  %s392_s7 = sshll.u32 %s602_s6, 4  ;;  %s393_s7 = int_to_ptr.vmem [resolvable:$true] %s392_s7 }
  0x2e   :  { %357 = vrot.lane.b32.xlu1 %v355_v28, %s600_s3  ;;  %s568_s26 = scalar_lea.vmem %s393_s7, 128  ;;  %p573_p3 = scmp.lt.s32.totalorder %s393_s7, %s393_s7 }
  0x2f   :  { %454 = vmatmul.mubr.msk.bf16.vlgmr.msra.gmra.mrb[0].mxu0 %vm81_vm1, %v57_v5  ;;  %p569_p2 = scmp.ne.s32.totalorder %s393_s7, %s568_s26  ;;  %p574_p4 = scmp.lt.s32.totalorder %s568_s26, %s568_s26 }
  0x30   :  { %493 = vmatprep.mubr.msk.bf16.mxu0 %vm599_vm0, %v598_v0  ;;  %462 = vmatpush3.bf16.msra.mxu1 %v508_v6 }
  0x31   :  { %463 = vmatprep.subr.bf16.mxu1 %v598_v0  ;;  %478 = vmatpush3.bf16.msra.mxu0 %v514_v12  ;;  %p575_p5 = por %p574_p4, %p573_p3 }
  0x32   :  { %479 = vmatprep.subr.bf16.mxu0 %v598_v0 }
  0x33   :  { %p576_p6 = pnand %p575_p5, %p569_p2 }
  0x34   :  { %464 = vmatpush3.bf16.msra.mxu1 %v509_v7 }
  0x35   :  { %465 = vmatprep.subr.bf16.mxu1 %v598_v0  ;;  %480 = vmatpush3.bf16.msra.mxu0 %v515_v13 }
  0x36   :  { %481 = vmatprep.subr.bf16.mxu0 %v598_v0 }
  0x38   :  { %466 = vmatpush3.bf16.msra.mxu1 %v510_v8 }
  0x39   :  { %467 = vmatprep.subr.bf16.mxu1 %v598_v0  ;;  %482 = vmatpush3.bf16.msra.mxu0 %v516_v14 }
  0x3a   :  { %483 = vmatprep.subr.bf16.mxu0 %v598_v0 }
  0x3c   :  { %468 = vmatpush3.bf16.msra.mxu1 %v511_v9 }
  0x3d   :  { %469 = vmatprep.subr.bf16.mxu1 %v598_v0  ;;  %484 = vmatpush3.bf16.msra.mxu0 %v517_v15 }
  0x3e   :  { %485 = vmatprep.subr.bf16.mxu0 %v598_v0 }
  0x40   :  { %470 = vmatpush3.bf16.msra.mxu1 %v512_v10 }
  0x41   :  { %471 = vmatprep.subr.bf16.mxu1 %v598_v0  ;;  %486 = vmatpush3.bf16.msra.mxu0 %v518_v16 }
  0x42   :  { %487 = vmatprep.subr.bf16.mxu0 %v598_v0 }
  0x44   :  { %472 = vmatpush3.bf16.msra.mxu1 %v513_v11 }
  0x45   :  { %488 = vmatpush3.bf16.msra.mxu0 %v519_v17 }
  0x46   :  { %489 = vmatprep.subr.bf16.mxu0 %v598_v0 }
  0x49   :  { %490 = vmatpush3.bf16.msra.mxu0 %v520_v26 }
  0x4a   :  { %491 = vmatprep.subr.bf16.mxu0 %v598_v0 }
  0x4d   :  { %492 = vmatpush3.bf16.msra.mxu0 %v521_v27 }
  0xa0   :  { %v358_v52 = vpop.permute.xlu1 %357 }
 0x102   :  { %v119_v19 = vpop.f32.mrb[0].mxu0 }
 0x103   :  { %v120_v20 = vadd.f32 %v406_v18, %v119_v19  ;;  %v455_v21 = vpop.f32.mrb[1].mxu0 }
 0x104   :  { %v122_v22 = vpop.f32.mrb[2].mxu0 }
 0x105   :  { %v125_v23 = vmax.f32 %v120_v20, 0.0  ;;  %v456_v24 = vpop.f32.mrb[3].mxu0 }
 0x107   :  { %v126_v25 = vpack.c.bf16 %v125_v23, %v125_v23 }
 0x109   :  { %474 = vmatmul.mubr.bf16.vlgmr.msra.gmra.mrb[0].mxu1 %v126_v25 }
 0x1dc   :  { %v232_v30 = vpop.f32.mrb[0].mxu1 }
 0x1dd   :  { %v233_v31 = vadd.f32 %v410_v29, %v232_v30  ;;  %v475_v32 = vpop.f32.mrb[1].mxu1 }
 0x1de   :  { %v235_v33 = vpop.f32.mrb[2].mxu1 }
 0x1df   :  { %v238_v34 = vmax.f32 %v233_v31, 0.0  ;;  %v476_v35 = vpop.f32.mrb[3].mxu1 }
 0x1e1   :  { %v239_v36 = vpack.c.bf16 %v238_v34, %v238_v34 }
 0x1e3   :  { %494 = vmatmul.mubr.bf16.vlgmr.msra.gmra.mrb[4].mxu0 %v239_v36 }
 0x2b6   :  { %v345_v38 = vpop.f32.mrb[4].mxu0 }
 0x2b7   :  { %v346_v39 = vadd.f32 %v419_v37, %v345_v38  ;;  %v495_v40 = vpop.f32.mrb[5].mxu0 }
 0x2b8   :  { %v348_v41 = vpop.f32.mrb[6].mxu0 }
 0x2b9   :  { %v496_v42 = vpop.f32.mrb[7].mxu0  ;;  %v369_v43 = vmul.f32 %v346_v39, %v346_v39  ;;  %v351_v44 = vmul.f32 0.5, %v346_v39  ;;  %v368_v47 = vadd.f32 1.0, %v346_v39 }
 0x2bb   :  { %371 = vrot.lane.b32.xlu0 %v369_v43, %s600_s3  ;;  %v352_v45 = vmul.f32 1.442695, %v351_v44 }
 0x2bd   :  { %522 = vpow2.f32 %v352_v45 }
 0x2c7   :  { %v523_v46 = vpop.eup %522 }
 0x2c8   :  { %v354_v49 = vmul.f32 %v523_v46, %v523_v46  ;;  %v360_v53 = vmul.f32 %v523_v46, %v358_v52 }
 0x32d   :  { %v372_v48 = vpop.permute.xlu0 %371 }
 0x32e   :  { %v374_v50 = vsub.f32 %v368_v47, %v372_v48 }
 0x330   :  { %v375_v51 = vsub.f32 %v374_v50, %v354_v49 }
 0x332   :  { %377 = vrot.lane.b32.xlu0 %v375_v51, %s601_s5 }
 0x336   :  { %362 = vrot.lane.b32.xlu0 %v360_v53, %s601_s5 }
 0x3a4   :  { %v378_v54 = vpop.permute.xlu0 %377 }
 0x3a5   :  { %v380_v55 = vsel %vm366_vm2, %v378_v54, 0.0 }
 0x3a6   :  { %381 = vadd.xlane.f32.xlu1 %v380_v55 }
 0x3a8   :  { %v363_v56 = vpop.permute.xlu0 %362 }
 0x3a9   :  { %v365_v57 = vadd.f32 %v363_v56, %v346_v39 }
 0x3ab   :  { %367 = vst.msk [vmem:[#allocation7] sm:$0xff] %vm366_vm2, %v365_v57 }
 0x3ac   :  { %579 = shalt.err (!%p576_p6)
}
 0x3ad   :  { %s580_s29 = scalar_lea.hbm %s787_s8, 128 }
 0x3ae   :  { %p581_p7 = scmp.ne.s32.totalorder %s787_s8, %s580_s29  ;;  %p584_p8 = scmp.lt.u32.totalorder %s580_s29, %s787_s8 }
 0x3b0   :  { %p586_p9 = pnand %p584_p8, %p581_p7 }
 0x3b2   :  { %589 = shalt.err (!%p586_p9)
}
 0x3b3   :  { %395 = dma.vmem_to_hbm [thread:$0]  %s393_s7, 128, %s787_s8, [#allocation4]   ;;  %vm384_vm3 = vcmask 7168  }
 0x433   :  { %v382_v58 = vpop.xlane.xlu1 %381 }
 0x434   :  { %v383_v59 = vmul.f32 -0.5, %v382_v58 }
 0x436   :  { %385 = vst.msk [vmem:[%s788_s9] sm:$0xff] %vm384_vm3, %v383_v59 }
 0x437   :  { %594 = dma.done.wait [#allocation4], 128  }
 0x438   :  { %595 = vsyncadd [#allocation4], 4294967168 }
 0x439   :  { %403 = vsyncpa [#allocation3], 1 }
 0x43a   :  { %404 = vsyncpa [#allocation6], 1 }
 0x43b   :  { %405 = vsyncpa [#allocation4], 1 }

</bundles_post_ra>
